<compile_context>
chip_gen: v7x
topology: tpu7x:2x2x1
jax: 0.10.0
libtpu: 0.0.40
codegen_flags: <defaults>
</compile_context>

<pallas_src>
import jax
import jax.numpy as jnp
from jax.experimental import pallas as pl
from jax.experimental.pallas import tpu as pltpu


# ----------------------------------------------------------------------------
# VMEM-aware tiling helpers
# ----------------------------------------------------------------------------
_VMEM_INFO_CACHE = {}


def _vmem_capacity_bytes():
    if "cap" not in _VMEM_INFO_CACHE:
        cap = 64 * 1024 * 1024                      # conservative default (v7x)
        try:
            info = pltpu.get_tpu_info()
            v = getattr(info, "vmem_capacity_bytes", None)
            if v:
                cap = int(v)
        except Exception:
            pass
        _VMEM_INFO_CACHE["cap"] = cap
    return _VMEM_INFO_CACHE["cap"]


def _vmem_limit_bytes():
    # Raise the scoped-VMEM limit towards physical capacity, with headroom for
    # compiler-internal scratch (v5e/v6e: 128 MiB physical, v7x: 64 MiB).
    return min(int(_vmem_capacity_bytes() * 0.8), 100 * 1024 * 1024)


def _tile_budget():
    # Working-set budget used when sizing tiles (conservative: half the limit).
    return _vmem_limit_bytes() // 2


def _round_up(n, m):
    return ((n + m - 1) // m) * m


def _choose_rows(R, per_row_bytes, fixed_bytes, cap, align):
    """Largest row tile (multiple of `align`, <= cap) whose double-buffered
    working set fits the VMEM budget; R is padded up to a tile multiple."""
    budget = max(_tile_budget() - fixed_bytes, 1 << 20)
    rt = min(R, cap, budget // max(per_row_bytes, 1))
    rt = max(align, (rt // align) * align)
    rt = min(rt, R)
    n_blocks = -(-R // rt)
    return rt, n_blocks * rt


def _choose_time_chunk(T, per_step_bytes, fixed_bytes, cap=32):
    """Largest divisor of T <= cap whose chunk working set fits VMEM.
    TODO(synk): front-pad the reversed gate stream so awkward/prime T does not
    degenerate to tc=1."""
    budget = max(_tile_budget() - fixed_bytes, 1 << 20)
    max_tc = max(1, min(cap, T, budget // max(per_step_bytes, 1)))
    tc = 1
    for d in range(1, int(max_tc) + 1):
        if T % d == 0:
            tc = d
    return tc


def _pad_rows(a, rows):
    if a.shape[0] == rows:
        return a
    return jnp.pad(a, ((0, rows - a.shape[0]),) + ((0, 0),) * (a.ndim - 1))


# ----------------------------------------------------------------------------
# Weight repacking: gate order (i,f,g,o) -> (i,f,o,g), zero-padded to H_p lanes
# ----------------------------------------------------------------------------
def _pack_gate_rows(w, H, H_p):
    """Reorder PyTorch LSTM gate rows (i,f,g,o) -> (i,f,o,g) and zero-pad each
    gate block from H to H_p rows.  Works for (4H, K) weights and (4H,) bias."""
    i, f, g, o = w[0:H], w[H:2 * H], w[2 * H:3 * H], w[3 * H:4 * H]
    if H_p == H:
        return jnp.concatenate([i, f, o, g], axis=0)
    pad = jnp.zeros((H_p - H,) + w.shape[1:], w.dtype)
    return jnp.concatenate([i, pad, f, pad, o, pad, g, pad], axis=0)


def _block_diag_whh(whh_f, whh_b, H, H_p):
    """Build blockdiag(Whh_f^T, Whh_b^T): (2H_p, 8H_p) for the fused per-step
    [h_f | h_b] @ W recurrent matmul."""
    def pack(w):
        p = _pack_gate_rows(w, H, H_p)                        # (4H_p, H)
        if H_p > H:
            p = jnp.concatenate(
                [p, jnp.zeros((4 * H_p, H_p - H), p.dtype)], axis=1)
        return p.T                                            # (H_p, 4H_p)

    wf, wb = pack(whh_f), pack(whh_b)
    z = jnp.zeros((H_p, 4 * H_p), wf.dtype)
    return jnp.concatenate(
        [jnp.concatenate([wf, z], axis=1),
         jnp.concatenate([z, wb], axis=1)], axis=0)           # (2H_p, 8H_p)


# ----------------------------------------------------------------------------
# Hoisted input projection: gates = input @ [W_ih_f^T | W_ih_b^T] + bias
# One big tiled matmul over T*B rows; fwd / bwd gate halves stored lane-dense.
# ----------------------------------------------------------------------------
def _proj_single_kernel(x_ref, w_ref, b_ref, gf_ref, gb_ref):
    g = (jnp.dot(x_ref[...], w_ref[...], preferred_element_type=jnp.float32)
         + b_ref[...])
    G4 = gf_ref.shape[-1]                      # multiple of 512 -> aligned
    gf_ref[...] = g[:, :G4].astype(gf_ref.dtype)
    gb_ref[...] = g[:, G4:].astype(gb_ref.dtype)


def _proj_pair_kernel(yf_ref, yb_ref, wf_ref, wb_ref, b_ref, gf_ref, gb_ref):
    # Layer >= 1: input is concat([y_fwd, y_bwd], -1); avoid materialising the
    # concat by splitting W along its input rows.
    g = (jnp.dot(yf_ref[...], wf_ref[...], preferred_element_type=jnp.float32)
         + jnp.dot(yb_ref[...], wb_ref[...], preferred_element_type=jnp.float32)
         + b_ref[...])
    G4 = gf_ref.shape[-1]
    gf_ref[...] = g[:, :G4].astype(gf_ref.dtype)
    gb_ref[...] = g[:, G4:].astype(gb_ref.dtype)


def _input_gates(inputs, weights, bias, T, B_p, H_p, matmul_dtype, gate_dtype,
                 align):
    """inputs: tuple of (T*B_p, Dk); weights: tuple of (Dk, 8H_p); bias (1,8H_p)."""
    R = T * B_p
    G4, G8 = 4 * H_p, 8 * H_p
    in_bytes = jnp.dtype(matmul_dtype).itemsize
    gate_bytes = jnp.dtype(gate_dtype).itemsize
    per_row = (2 * sum(a.shape[-1] for a in inputs) * in_bytes
               + 2 * 2 * G4 * gate_bytes)
    fixed = 2 * sum(int(w.size) for w in weights) * in_bytes + 2 * G8 * 4
    rt, R_pad = _choose_rows(R, per_row, fixed, cap=1024, align=align)

    ins = [_pad_rows(a.astype(matmul_dtype), R_pad) for a in inputs]
    ws = [w.astype(matmul_dtype) for w in weights]
    b = bias.astype(jnp.float32)

    in_specs = ([pl.BlockSpec((rt, a.shape[-1]), lambda r: (r, 0)) for a in ins]
                + [pl.BlockSpec(w.shape, lambda r: (0, 0)) for w in ws]
                + [pl.BlockSpec((1, G8), lambda r: (0, 0))])
    kernel = _proj_single_kernel if len(ins) == 1 else _proj_pair_kernel

    gf, gb = pl.pallas_call(
        kernel,
        out_shape=(jax.ShapeDtypeStruct((R_pad, G4), gate_dtype),
                   jax.ShapeDtypeStruct((R_pad, G4), gate_dtype)),
        grid=(R_pad // rt,),
        in_specs=in_specs,
        out_specs=(pl.BlockSpec((rt, G4), lambda r: (r, 0)),
                   pl.BlockSpec((rt, G4), lambda r: (r, 0))),
        compiler_params=pltpu.CompilerParams(
            dimension_semantics=("parallel",),
            vmem_limit_bytes=_vmem_limit_bytes()),
    )(*ins, *ws, b)

    if R_pad > R:
        gf, gb = gf[:R], gb[:R]
    return gf.reshape(T, B_p, G4), gb.reshape(T, B_p, G4)


# ----------------------------------------------------------------------------
# Fused bidirectional LSTM recurrence: one layer, both directions, chunked time.
# Packed gate order is (i, f, o | g).  h/c carries live in VMEM scratch as a
# single lane-concatenated (B_p, 2H_p) buffer per carry.
# ----------------------------------------------------------------------------
def _bilstm_chunk_kernel(gxf_ref, gxb_ref, whh_ref, yf_ref, yb_ref,
                         h_ref, c_ref):
    @pl.when(pl.program_id(0) == 0)
    def _():
        h_ref[...] = jnp.zeros_like(h_ref)
        c_ref[...] = jnp.zeros_like(c_ref)

    tc = yf_ref.shape[0]
    Hp = yf_ref.shape[-1]
    G4 = 4 * Hp

    def cell(gates, c_prev):
        s_ = jax.nn.sigmoid(gates[:, :3 * Hp])          # one EUP op: i, f, o
        i = s_[:, :Hp]
        f = s_[:, Hp:2 * Hp]
        o = s_[:, 2 * Hp:3 * Hp]
        g = jnp.tanh(gates[:, 3 * Hp:])                 # one EUP op: g
        c_new = f * c_prev + i * g
        h_new = o * jnp.tanh(c_new)
        return h_new, c_new

    def body(s, carry):
        # One fused MXU push for both directions: [h_f | h_b] @ blockdiag(Whh).
        # Whh is read from its VMEM ref here (not hoisted into vregs).
        rec = jnp.dot(h_ref[...].astype(whh_ref.dtype), whh_ref[...],
                      preferred_element_type=jnp.float32)       # (B, 8Hp)
        r = tc - 1 - s                    # backward walks this (reversed) chunk
        gf = gxf_ref[s].astype(jnp.float32) + rec[:, :G4]
        gb = gxb_ref[r].astype(jnp.float32) + rec[:, G4:]

        c_cat = c_ref[...]
        hf, cf = cell(gf, c_cat[:, :Hp])
        hb, cb = cell(gb, c_cat[:, Hp:])

        h_ref[...] = jnp.concatenate([hf, hb], axis=-1)  # single dense store
        c_ref[...] = jnp.concatenate([cf, cb], axis=-1)
        yf_ref[s] = hf.astype(yf_ref.dtype)
        yb_ref[r] = hb.astype(yb_ref.dtype)
        return carry

    jax.lax.fori_loop(0, tc, body, 0, unroll=True)


def _bilstm_layer(gx_f, gx_b, whh_bd, y_dtype):
    """gx_*: (T, B_p, 4H_p) precomputed input gates; whh_bd: (2H_p, 8H_p)."""
    T, B_p, G4 = gx_f.shape
    H_p = G4 // 4
    gate_bytes = jnp.dtype(gx_f.dtype).itemsize
    y_bytes = jnp.dtype(y_dtype).itemsize
    per_step = 2 * 2 * B_p * G4 * gate_bytes + 2 * 2 * B_p * H_p * y_bytes
    fixed = (2 * int(whh_bd.size) * jnp.dtype(whh_bd.dtype).itemsize
             + 2 * B_p * 2 * H_p * 4)
    tc = _choose_time_chunk(T, per_step, fixed, cap=32)
    n_chunks = T // tc

    fwd_map = lambda c: (c, 0, 0)
    bwd_map = lambda c: (n_chunks - 1 - c, 0, 0)   # reversed time, no copies

    # TODO(synk): on v7x run fwd/bwd on the two TensorCores instead of fusing.
    return pl.pallas_call(
        _bilstm_chunk_kernel,
        out_shape=(jax.ShapeDtypeStruct((T, B_p, H_p), y_dtype),
                   jax.ShapeDtypeStruct((T, B_p, H_p), y_dtype)),
        grid_spec=pltpu.PrefetchScalarGridSpec(
            num_scalar_prefetch=0,
            grid=(n_chunks,),
            in_specs=[
                pl.BlockSpec((tc, B_p, G4), fwd_map),
                pl.BlockSpec((tc, B_p, G4), bwd_map),
                pl.BlockSpec(whh_bd.shape, lambda c: (0, 0)),
            ],
            out_specs=(
                pl.BlockSpec((tc, B_p, H_p), fwd_map),
                pl.BlockSpec((tc, B_p, H_p), bwd_map),
            ),
            scratch_shapes=[
                pltpu.VMEM((B_p, 2 * H_p), jnp.float32),   # h carry [fwd|bwd]
                pltpu.VMEM((B_p, 2 * H_p), jnp.float32),   # c carry [fwd|bwd]
            ],
        ),
        compiler_params=pltpu.CompilerParams(
            dimension_semantics=("arbitrary",),            # recurrence: serial
            vmem_limit_bytes=_vmem_limit_bytes()),
    )(gx_f, gx_b, whh_bd)


# ----------------------------------------------------------------------------
# Fused epilogue: out = relu(concat(y_fwd[:, :H], y_bwd[:, :H], -1)) + residual
# Single lane-dense full-width store per tile.
# ----------------------------------------------------------------------------
def _residual_identity_kernel(yf_ref, yb_ref, x_ref, o_ref):
    H = o_ref.shape[-1] // 2
    yf = jnp.maximum(yf_ref[...][:, :H].astype(jnp.float32), 0.0)
    yb = jnp.maximum(yb_ref[...][:, :H].astype(jnp.float32), 0.0)
    o_ref[...] = (jnp.concatenate([yf, yb], axis=-1)
                  + x_ref[...].astype(jnp.float32)).astype(o_ref.dtype)


def _residual_linear_kernel(yf_ref, yb_ref, x_ref, w_ref, b_ref, o_ref):
    H = o_ref.shape[-1] // 2
    res = (jnp.dot(x_ref[...].astype(w_ref.dtype), w_ref[...],
                   preferred_element_type=jnp.float32) + b_ref[...])
    yf = jnp.maximum(yf_ref[...][:, :H].astype(jnp.float32), 0.0)
    yb = jnp.maximum(yb_ref[...][:, :H].astype(jnp.float32), 0.0)
    o_ref[...] = (jnp.concatenate([yf, yb], axis=-1) + res).astype(o_ref.dtype)


def _residual(y_f, y_b, x_p, B, H, solid, matmul_dtype, out_dtype, align):
    T, B_p, H_p = y_f.shape
    D_out = 2 * H
    D_in = x_p.shape[-1]
    R = T * B_p

    y_bytes = jnp.dtype(y_f.dtype).itemsize
    x_bytes = jnp.dtype(x_p.dtype).itemsize
    o_bytes = jnp.dtype(out_dtype).itemsize
    per_row = 2 * 2 * H_p * y_bytes + 2 * D_in * x_bytes + 2 * D_out * o_bytes
    fixed = 0
    if solid is not None:
        fixed = 2 * (D_in * D_out * jnp.dtype(matmul_dtype).itemsize + D_out * 4)
    rt, R_pad = _choose_rows(R, per_row, fixed, cap=1024, align=align)

    yf2 = _pad_rows(y_f.reshape(R, H_p), R_pad)
    yb2 = _pad_rows(y_b.reshape(R, H_p), R_pad)
    x2 = _pad_rows(x_p.reshape(R, D_in), R_pad)

    common = dict(
        out_shape=jax.ShapeDtypeStruct((R_pad, D_out), out_dtype),
        grid=(R_pad // rt,),
        out_specs=pl.BlockSpec((rt, D_out), lambda r: (r, 0)),
        compiler_params=pltpu.CompilerParams(
            dimension_semantics=("parallel",),
            vmem_limit_bytes=_vmem_limit_bytes()),
    )
    if solid is None:                          # in_feature == out_feature
        out2 = pl.pallas_call(
            _residual_identity_kernel,
            in_specs=[pl.BlockSpec((rt, H_p), lambda r: (r, 0)),
                      pl.BlockSpec((rt, H_p), lambda r: (r, 0)),
                      pl.BlockSpec((rt, D_in), lambda r: (r, 0))],
            **common)(yf2, yb2, x2)
    else:
        w_s, b_s = solid                       # (D_out, D_in), (D_out,)
        out2 = pl.pallas_call(
            _residual_linear_kernel,
            in_specs=[pl.BlockSpec((rt, H_p), lambda r: (r, 0)),
                      pl.BlockSpec((rt, H_p), lambda r: (r, 0)),
                      pl.BlockSpec((rt, D_in), lambda r: (r, 0)),
                      pl.BlockSpec((D_in, D_out), lambda r: (0, 0)),
                      pl.BlockSpec((1, D_out), lambda r: (0, 0))],
            **common)(yf2, yb2, x2,
                      w_s.T.astype(matmul_dtype),
                      b_s.reshape(1, D_out).astype(jnp.float32))

    out = out2[:R].reshape(T, B_p, D_out)
    return out[:, :B, :] if B_p > B else out


# ----------------------------------------------------------------------------
# Full resLSTMblock forward
# ----------------------------------------------------------------------------
def res_lstm_block(x, params, matmul_dtype=jnp.float32):
    """x: (T, B, in_feature) -> (T, B, out_feature).

    matmul_dtype=jnp.bfloat16 uses bf16 MXU operands and bf16 gate/output
    streams (recommended on v5e/v6e/v7x, all bf16-native MXUs); accumulation,
    h/c carries and all gate nonlinearities stay float32.  Note the recurrent
    h is re-quantised to bf16 each step before h @ Whh, so very long sequences
    may want the default f32 path if accuracy-sensitive.
    """
    T, B, D_in = x.shape
    layers = params["lstm"]
    H = layers[0]["fwd"][1].shape[1]            # w_hh: (4H, H)
    H_p = _round_up(H, 128)                     # lane-aligned gate width
    use_bf16 = matmul_dtype == jnp.bfloat16
    gate_dtype = jnp.bfloat16 if use_bf16 else jnp.float32
    y_dtype = jnp.bfloat16 if use_bf16 else jnp.float32
    align = 16 if use_bf16 else 8               # sublane alignment
    B_p = _round_up(B, align)
    x_p = x if B_p == B else jnp.pad(x, ((0, 0), (0, B_p - B), (0, 0)))

    yf = yb = None
    for li, layer in enumerate(layers):
        wih_f, whh_f, bih_f, bhh_f = layer["fwd"]
        wih_b, whh_b, bih_b, bhh_b = layer["bwd"]

        # bias folded into the hoisted projection (dropped from the recurrence)
        bias = jnp.concatenate(
            [_pack_gate_rows(bih_f + bhh_f, H, H_p),
             _pack_gate_rows(bih_b + bhh_b, H, H_p)]).reshape(1, 8 * H_p)
        whh_bd = _block_diag_whh(whh_f, whh_b, H, H_p).astype(matmul_dtype)

        if li == 0:
            w_cat = jnp.concatenate(
                [_pack_gate_rows(wih_f, H, H_p).T,
                 _pack_gate_rows(wih_b, H, H_p).T], axis=1)      # (D_in, 8H_p)
            gf, gb = _input_gates(
                (x_p.reshape(T * B_p, D_in),), (w_cat,), bias,
                T, B_p, H_p, matmul_dtype, gate_dtype, align)
        else:
            # wih: (4H, 2H); columns [:H] multiply y_fwd, [H:] multiply y_bwd.
            w_from_yf = jnp.concatenate(
                [_pad_rows(_pack_gate_rows(wih_f[:, :H], H, H_p).T, H_p),
                 _pad_rows(_pack_gate_rows(wih_b[:, :H], H, H_p).T, H_p)],
                axis=1)                                          # (H_p, 8H_p)
            w_from_yb = jnp.concatenate(
                [_pad_rows(_pack_gate_rows(wih_f[:, H:], H, H_p).T, H_p),
                 _pad_rows(_pack_gate_rows(wih_b[:, H:], H, H_p).T, H_p)],
                axis=1)
            gf, gb = _input_gates(
                (yf.reshape(T * B_p, H_p), yb.reshape(T * B_p, H_p)),
                (w_from_yf, w_from_yb), bias,
                T, B_p, H_p, matmul_dtype, gate_dtype, align)

        yf, yb = _bilstm_layer(gf, gb, whh_bd, y_dtype)

    return _residual(yf, yb, x_p, B, H, params["solid"],
                     matmul_dtype, x.dtype, align)


# ----------------------------------------------------------------------------
# Deterministic parameter init (same shapes as the PyTorch module)
# ----------------------------------------------------------------------------
def init_params(key, in_feature, out_feature, cellnum):
    H = out_feature // 2
    scale = 1.0 / jnp.sqrt(jnp.float32(H))
    params = {"lstm": []}
    keys = iter(jax.random.split(key, 2 + cellnum * 8))

    if in_feature != out_feature:
        w_s = jax.random.uniform(next(keys), (out_feature, in_feature),
                                 jnp.float32, -scale, scale)
        b_s = jax.random.uniform(next(keys), (out_feature,),
                                 jnp.float32, -scale, scale)
        params["solid"] = (w_s, b_s)
    else:
        next(keys); next(keys)
        params["solid"] = None

    for layer in range(cellnum):
        d_in = in_feature if layer == 0 else out_feature
        layer_p = {}
        for direction in ("fwd", "bwd"):
            w_ih = jax.random.uniform(next(keys), (4 * H, d_in),
                                      jnp.float32, -scale, scale)
            w_hh = jax.random.uniform(next(keys), (4 * H, H),
                                      jnp.float32, -scale, scale)
            b_ih = jax.random.uniform(next(keys), (4 * H,),
                                      jnp.float32, -scale, scale)
            b_hh = jax.random.uniform(next(keys), (4 * H,),
                                      jnp.float32, -scale, scale)
            layer_p[direction] = (w_ih, w_hh, b_ih, b_hh)
        params["lstm"].append(layer_p)
    return params


# ----------------------------------------------------------------------------
# Pure-JAX reference (lax.scan) for correctness checking
# ----------------------------------------------------------------------------
def _lstm_dir_ref(x, w_ih, w_hh, b_ih, b_hh):
    H = w_hh.shape[1]

    def step(carry, x_t):
        h, c = carry
        gates = x_t @ w_ih.T + h @ w_hh.T + b_ih + b_hh
        i = jax.nn.sigmoid(gates[:, :H])
        f = jax.nn.sigmoid(gates[:, H:2 * H])
        g = jnp.tanh(gates[:, 2 * H:3 * H])
        o = jax.nn.sigmoid(gates[:, 3 * H:])
        c = f * c + i * g
        h = o * jnp.tanh(c)
        return (h, c), h

    B = x.shape[1]
    init = (jnp.zeros((B, H), x.dtype), jnp.zeros((B, H), x.dtype))
    _, ys = jax.lax.scan(step, init, x)
    return ys


def res_lstm_block_ref(x, params):
    h = x
    for layer in params["lstm"]:
        fwd = _lstm_dir_ref(h, *layer["fwd"])
        bwd = _lstm_dir_ref(h[::-1], *layer["bwd"])[::-1]
        h = jnp.concatenate([fwd, bwd], axis=-1)
    if params["solid"] is None:
        x_ = x
    else:
        w_s, b_s = params["solid"]
        x_ = x @ w_s.T + b_s
    return jnp.maximum(h, 0.0) + x_


# ----------------------------------------------------------------------------
if __name__ == "__main__":
    key = jax.random.PRNGKey(0)
    k = jax.random.split(key, 6)

    # config 1: in_feature != out_feature (uses the `solid` Linear path)
    T, B, IN, OUT, CELLS = 8, 2, 16, 32, 2
    x = jax.random.normal(k[0], (T, B, IN), jnp.float32)
    params = init_params(k[1], IN, OUT, CELLS)
    ref = jax.block_until_ready(res_lstm_block_ref(x, params))
    out = jax.block_until_ready(res_lstm_block(x, params))
    assert out.shape == (T, B, OUT), out.shape
    assert jnp.allclose(out, ref, atol=1e-4, rtol=1e-4), \
        float(jnp.max(jnp.abs(out - ref)))

    # bf16 MXU operands + bf16 gate / layer-output streams; f32 carries & acc
    out_bf16 = jax.block_until_ready(
        res_lstm_block(x, params, matmul_dtype=jnp.bfloat16))
    assert jnp.allclose(out_bf16, ref, atol=1e-1, rtol=1e-1), \
        float(jnp.max(jnp.abs(out_bf16 - ref)))

    # config 2: in_feature == out_feature (identity residual path)
    x2 = jax.random.normal(k[2], (T, B, OUT), jnp.float32)
    params2 = init_params(k[3], OUT, OUT, 1)
    ref2 = jax.block_until_ready(res_lstm_block_ref(x2, params2))
    out2 = jax.block_until_ready(res_lstm_block(x2, params2))
    assert out2.shape == (T, B, OUT), out2.shape
    assert jnp.allclose(out2, ref2, atol=1e-4, rtol=1e-4), \
        float(jnp.max(jnp.abs(out2 - ref2)))

    # config 3: longer sequence -> multiple time chunks (exercises the reversed
    # backward index_map and carry across chunks) + odd batch (sublane padding)
    T3, B3 = 40, 3
    x3 = jax.random.normal(k[4], (T3, B3, IN), jnp.float32)
    params3 = init_params(k[5], IN, OUT, CELLS)
    ref3 = jax.block_until_ready(res_lstm_block_ref(x3, params3))
    out3 = jax.block_until_ready(res_lstm_block(x3, params3))
    assert out3.shape == (T3, B3, OUT), out3.shape
    assert jnp.allclose(out3, ref3, atol=1e-3, rtol=1e-3), \
        float(jnp.max(jnp.abs(out3 - ref3)))

    print("KERNEL_OK")
</pallas_src>

<mosaic_0001>
module attributes {stable_mosaic.version = 11 : i64} {
  func.func @_proj_single_kernel(%arg0: i32, %arg1: memref<64x16xf32, #tpu.memory_space<vmem>>, %arg2: memref<16x1024xf32, #tpu.memory_space<vmem>>, %arg3: memref<1x1024xf32, #tpu.memory_space<vmem>>, %arg4: memref<64x512xf32, #tpu.memory_space<vmem>>, %arg5: memref<64x512xf32, #tpu.memory_space<vmem>>) attributes {dimension_semantics = [#tpu.dimension_semantics<parallel>], iteration_bounds = array<i64: 1>, scalar_prefetch = 0 : i64, scratch_operands = 0 : i64, tpu.core_type = #tpu.core_type<tc>, window_params = [{transform_indices = @transform_0, window_bounds = array<i64: 64, 16>}, {pipeline_mode = #tpu.pipeline_mode<synchronous>, transform_indices = @transform_1, window_bounds = array<i64: 16, 1024>}, {pipeline_mode = #tpu.pipeline_mode<synchronous>, transform_indices = @transform_2, window_bounds = array<i64: 1, 1024>}, {transform_indices = @transform_3, window_bounds = array<i64: 64, 512>}, {transform_indices = @transform_4, window_bounds = array<i64: 64, 512>}]} {
    %c0 = arith.constant 0 : index
    %c0_0 = arith.constant 0 : index
    %0 = vector.load %arg1[%c0, %c0_0] : memref<64x16xf32, #tpu.memory_space<vmem>>, vector<64x16xf32>
    %c0_1 = arith.constant 0 : index
    %c0_2 = arith.constant 0 : index
    %1 = vector.load %arg2[%c0_1, %c0_2] : memref<16x1024xf32, #tpu.memory_space<vmem>>, vector<16x1024xf32>
    %cst = arith.constant dense<0.000000e+00> : vector<64x1024xf32>
    %2 = tpu.matmul %0, %1, %cst {dimension_numbers = #tpu.dot_dimension_numbers<[1], [0], [0], [1], [0, 0, 1, 1], [], []>} : vector<64x16xf32>, vector<16x1024xf32>, vector<64x1024xf32> -> vector<64x1024xf32>
    %c0_3 = arith.constant 0 : index
    %c0_4 = arith.constant 0 : index
    %3 = vector.load %arg3[%c0_3, %c0_4] : memref<1x1024xf32, #tpu.memory_space<vmem>>, vector<1x1024xf32>
    %4 = vector.broadcast %3 : vector<1x1024xf32> to vector<64x1024xf32>
    %5 = arith.addf %2, %4 : vector<64x1024xf32>
    %6 = vector.extract_strided_slice %5 {offsets = [0, 0], sizes = [64, 512], strides = [1, 1]} : vector<64x1024xf32> to vector<64x512xf32>
    %c0_5 = arith.constant 0 : index
    %c0_6 = arith.constant 0 : index
    %7 = vector.load %arg4[%c0_5, %c0_6] : memref<64x512xf32, #tpu.memory_space<vmem>>, vector<64x512xf32>
    tpu.vector_store %arg4[%c0_5, %c0_6], %6 {strides = array<i32>} : memref<64x512xf32, #tpu.memory_space<vmem>>, vector<64x512xf32>,
    %8 = vector.extract_strided_slice %5 {offsets = [0, 512], sizes = [64, 512], strides = [1, 1]} : vector<64x1024xf32> to vector<64x512xf32>
    %c0_7 = arith.constant 0 : index
    %c0_8 = arith.constant 0 : index
    %9 = vector.load %arg5[%c0_7, %c0_8] : memref<64x512xf32, #tpu.memory_space<vmem>>, vector<64x512xf32>
    tpu.vector_store %arg5[%c0_7, %c0_8], %8 {strides = array<i32>} : memref<64x512xf32, #tpu.memory_space<vmem>>, vector<64x512xf32>,
    return
  }
  func.func @transform_0(%arg0: i32) -> (i32, i32) {
    %c0_i32 = arith.constant 0 : i32
    %c0_i32_0 = arith.constant 0 : i32
    return %arg0, %c0_i32 : i32, i32
  }
  func.func @transform_1(%arg0: i32) -> (i32, i32) {
    %c0_i32 = arith.constant 0 : i32
    %c0_i32_0 = arith.constant 0 : i32
    %c0_i32_1 = arith.constant 0 : i32
    return %c0_i32, %c0_i32_0 : i32, i32
  }
  func.func @transform_2(%arg0: i32) -> (i32, i32) {
    %c0_i32 = arith.constant 0 : i32
    %c0_i32_0 = arith.constant 0 : i32
    %c0_i32_1 = arith.constant 0 : i32
    return %c0_i32, %c0_i32_0 : i32, i32
  }
  func.func @transform_3(%arg0: i32) -> (i32, i32) {
    %c0_i32 = arith.constant 0 : i32
    %c0_i32_0 = arith.constant 0 : i32
    return %arg0, %c0_i32 : i32, i32
  }
  func.func @transform_4(%arg0: i32) -> (i32, i32) {
    %c0_i32 = arith.constant 0 : i32
    %c0_i32_0 = arith.constant 0 : i32
    return %arg0, %c0_i32 : i32, i32
  }
}

</mosaic_0001>

<bundles_post_ra>
// kernel: tpu_custom_call.1
= control target key start
LH: loop header
LB: loop body
LE: loop exit
PB: predicated region body
PF: predicated region fallthrough
CT: control target
= control target key end

     0   :  { %10 = vsyncpa [#allocation3], 0  ;;  %s1079_s0 = inlined_call_operand.vmem [shape: f32[64,16], index: 0, kind: input, shape index: {}]   ;;  %s1080_s1 = inlined_call_operand.hbm [shape: f32[16,1024], index: 1, kind: input, shape index: {}]   ;;  %s1081_s2 = inlined_call_operand.vmem [shape: f32[1,1024], index: 2, kind: input, shape index: {}]   ;;  %s1082_s3 = inlined_call_operand.hbm [shape: f32[64,512], index: 3, kind: output, shape index: {0}]   ;;  %s1083_s4 = inlined_call_operand.hbm [shape: f32[64,512], index: 4, kind: output, shape index: {1}]  }
   0x1   :  { %11 = vsyncpa [#allocation4], 0 }
   0x2   :  { %12 = vsyncpa [#allocation7], 0  ;;  %s800_s15 = smov [#allocation2]   ;;  %s728_s19 = scalar_lea.hbm %s1080_s1, 2048 }
   0x3   :  { %s20_s16 = sshll.u32 %s800_s15, 4  ;;  %p729_p0 = scmp.ne.s32.totalorder %s1080_s1, %s728_s19  ;;  %s21_s16 = int_to_ptr.vmem [resolvable:$true] %s20_s16 }
   0x4   :  { %p732_p1 = scmp.lt.u32.totalorder %s728_s19, %s1080_s1 }
   0x6   :  { %p734_p2 = pnand %p732_p1, %p729_p0 }
   0x8   :  { %737 = shalt.err (!%p734_p2)
}
   0x9   :  { %s738_s24 = scalar_lea.vmem %s21_s16, 2048  ;;  %p743_p4 = scmp.lt.s32.totalorder %s21_s16, %s21_s16 }
   0xa   :  { %p739_p3 = scmp.ne.s32.totalorder %s21_s16, %s738_s24  ;;  %p744_p5 = scmp.lt.s32.totalorder %s738_s24, %s738_s24 }
   0xc   :  { %p745_p6 = por %p744_p5, %p743_p4 }
   0xe   :  { %p746_p7 = pnand %p745_p6, %p739_p3 }
  0x10   :  { %749 = shalt.err (!%p746_p7)
}
  0x11   :  { %s801_s25 = smov 1024   ;;  %s802_s26 = smov 64  }
  0x12   :  { %26 = dma.hbm_to_vmem [thread:$0]  %s1080_s1, 2048, %s21_s16, [#allocation3], %s801_s25, %s801_s25, %s802_s26  }
  0x13   :  { %794 = dma.done.wait [#allocation3], 2048  }
  0x14   :  { %795 = vsyncadd [#allocation3], 4294965248  ;;  %v803_v0 = vmov 0.0   ;;  %v41_v1 = vld [vmem:[#allocation2 + $0x8] sm:$0xff]  ;;  %v43_v3 = vld [vmem:[#allocation2 + $0x18] sm:$0xff]  ;;  %vm98_vm0 = vcmask 130048   ;;  %v58_v33 = vlaneseq }
  0x15   :  { %187 = vmatprep.mubr.f32.mxu0 %v803_v0  ;;  %300 = vmatprep.mubr.f32.mxu1 %v803_v0  ;;  %v49_v2 = vld [vmem:[#allocation2 + $0x48] sm:$0xff]  ;;  %v51_v5 = vld [vmem:[#allocation2 + $0x58] sm:$0xff]  ;;  %v40_v6 = vld [vmem:[#allocation2] sm:$0xff] }
  0x16   :  { %v704_v4 = vpack.c.bf16 %v49_v2, %v41_v1  ;;  %v48_v7 = vld [vmem:[#allocation2 + $0x40] sm:$0xff]  ;;  %v708_v8 = vpack.c.bf16 %v51_v5, %v43_v3  ;;  %v42_v10 = vld [vmem:[#allocation2 + $0x10] sm:$0xff]  ;;  %v45_v14 = vld [vmem:[#allocation2 + $0x28] sm:$0xff]  ;;  %v939_v34 = vshrl.u32 %v58_v33, 7 }
  0x17   :  { %v706_v9 = vpack.c.bf16 %v48_v7, %v40_v6  ;;  %v50_v11 = vld [vmem:[#allocation2 + $0x50] sm:$0xff]  ;;  %v850_v12 = vld [vmem:[%s1079_s0] sm:$0xff]  ;;  %v53_v15 = vld [vmem:[#allocation2 + $0x68] sm:$0xff] }
  0x18   :  { %705 = vmatprep.subr.bf16.mxu0 %v704_v4  ;;  %v710_v13 = vpack.c.bf16 %v50_v11, %v42_v10  ;;  %v47_v16 = vld [vmem:[#allocation2 + $0x38] sm:$0xff]  ;;  %709 = vmatprep.subr.bf16.mxu1 %v708_v8  ;;  %v712_v17 = vpack.c.bf16 %v53_v15, %v45_v14  ;;  %v44_v19 = vld [vmem:[#allocation2 + $0x20] sm:$0xff]  ;;  %v46_v23 = vld [vmem:[#allocation2 + $0x30] sm:$0xff]  ;;  %v60_v35 = vsub.s32 0, %v939_v34  ;;  %v68_v37 = vsub.s32 2, %v939_v34 }
  0x19   :  { %707 = vmatpush1.bf16.msra.mxu0 %v706_v9  ;;  %v55_v18 = vld [vmem:[#allocation2 + $0x78] sm:$0xff]  ;;  %v52_v20 = vld [vmem:[#allocation2 + $0x60] sm:$0xff]  ;;  %v54_v24 = vld [vmem:[#allocation2 + $0x70] sm:$0xff]  ;;  %v64_v38 = vsub.s32 1, %v939_v34  ;;  %v72_v39 = vsub.s32 3, %v939_v34 }
  0x1a   :  { %711 = vmatpush1.bf16.msra.mxu1 %v710_v13  ;;  %v716_v21 = vpack.c.bf16 %v55_v18, %v47_v16  ;;  %v714_v22 = vpack.c.bf16 %v52_v20, %v44_v19  ;;  %713 = vmatprep.subr.bf16.mxu0 %v712_v17  ;;  %v718_v25 = vpack.c.bf16 %v54_v24, %v46_v23  ;;  %v33_v26 = vld [vmem:[%s1079_s0 + $0x8] sm:$0xff]  ;;  %v34_v27 = vld [vmem:[%s1079_s0 + $0x10] sm:$0xff]  ;;  %v35_v28 = vld [vmem:[%s1079_s0 + $0x18] sm:$0xff] }
  0x1b   :  { %v36_v29 = vld [vmem:[%s1079_s0 + $0x20] sm:$0xff]  ;;  %v37_v30 = vld [vmem:[%s1079_s0 + $0x28] sm:$0xff]  ;;  %v38_v31 = vld [vmem:[%s1079_s0 + $0x30] sm:$0xff] }
  0x1c   :  { %672 = vmatmul.mubr.msk.f32.vlgmr.msra.gmra.mrb[0].mxu0 %vm98_vm0, %v850_v12  ;;  %717 = vmatprep.subr.bf16.mxu1 %v716_v21  ;;  %v39_v32 = vld [vmem:[%s1079_s0 + $0x38] sm:$0xff]  ;;  %v945_v36 = vld [vmem:[%s1081_s2] sm:$0xff]  ;;  %s804_s2 = smov [#allocation5]  }
  0x1d   :  { %680 = vmatmul.mubr.msk.f32.vlgmr.msra.gmra.mrb[0].mxu1 %vm98_vm0, %v850_v12  ;;  %715 = vmatpush1.bf16.msra.mxu0 %v714_v22  ;;  %v951_v40 = vrot.slane %v945_v36, %v60_v35  ;;  %v954_v41 = vrot.slane %v945_v36, %v68_v37  ;;  %v957_v42 = vrot.slane %v945_v36, %v64_v38  ;;  %v84_v38 = vsub.s32 6, %v939_v34  ;;  %s644_s19 = sshll.u32 %s804_s2, 4  ;;  %s1006_s19 = int_to_ptr.vmem [resolvable:$true] %s644_s19 }
  0x1e   :  { %719 = vmatpush1.bf16.msra.mxu1 %v718_v25  ;;  %193 = vmatprep.mubr.f32.mxu0 %v803_v0  ;;  %v960_v43 = vrot.slane %v945_v36, %v72_v39  ;;  %v80_v39 = vsub.s32 5, %v939_v34  ;;  %s750_s20 = scalar_lea.vmem %s1006_s19, 4096  ;;  %p755_p9 = scmp.lt.s32.totalorder %s1006_s19, %s1006_s19 }
  0x1f   :  { %306 = vmatprep.mubr.f32.mxu1 %v803_v0  ;;  %p751_p8 = scmp.ne.s32.totalorder %s1006_s19, %s750_s20  ;;  %p756_p10 = scmp.lt.s32.totalorder %s750_s20, %s750_s20 }
  0x20   :  { %673 = vmatmul.mubr.msk.f32.gmra.mrb[2].mxu0 %vm98_vm0, %v33_v26 }
  0x21   :  { %681 = vmatmul.mubr.msk.f32.gmra.mrb[2].mxu1 %vm98_vm0, %v33_v26  ;;  %199 = vmatprep.mubr.f32.mxu0 %v803_v0  ;;  %p757_p11 = por %p756_p10, %p755_p9 }
  0x22   :  { %312 = vmatprep.mubr.f32.mxu1 %v803_v0 }
  0x23   :  { %p758_p12 = pnand %p757_p11, %p751_p8 }
  0x24   :  { %674 = vmatmul.mubr.msk.f32.gmra.mrb[4].mxu0 %vm98_vm0, %v34_v27 }
  0x25   :  { %682 = vmatmul.mubr.msk.f32.gmra.mrb[4].mxu1 %vm98_vm0, %v34_v27  ;;  %205 = vmatprep.mubr.f32.mxu0 %v803_v0 }
  0x26   :  { %318 = vmatprep.mubr.f32.mxu1 %v803_v0 }
  0x28   :  { %675 = vmatmul.mubr.msk.f32.gmra.mrb[6].mxu0 %vm98_vm0, %v35_v28 }
  0x29   :  { %683 = vmatmul.mubr.msk.f32.gmra.mrb[6].mxu1 %vm98_vm0, %v35_v28  ;;  %211 = vmatprep.mubr.f32.mxu0 %v803_v0 }
  0x2a   :  { %324 = vmatprep.mubr.f32.mxu1 %v803_v0 }
  0x2c   :  { %676 = vmatmul.mubr.msk.f32.gmra.mrb[8].mxu0 %vm98_vm0, %v36_v29 }
  0x2d   :  { %684 = vmatmul.mubr.msk.f32.gmra.mrb[8].mxu1 %vm98_vm0, %v36_v29  ;;  %217 = vmatprep.mubr.f32.mxu0 %v803_v0 }
  0x2e   :  { %330 = vmatprep.mubr.f32.mxu1 %v803_v0 }
  0x30   :  { %677 = vmatmul.mubr.msk.f32.gmra.mrb[10].mxu0 %vm98_vm0, %v37_v30 }
  0x31   :  { %685 = vmatmul.mubr.msk.f32.gmra.mrb[10].mxu1 %vm98_vm0, %v37_v30  ;;  %223 = vmatprep.mubr.f32.mxu0 %v803_v0 }
  0x32   :  { %336 = vmatprep.mubr.f32.mxu1 %v803_v0 }
  0x34   :  { %678 = vmatmul.mubr.msk.f32.gmra.mrb[12].mxu0 %vm98_vm0, %v38_v31 }
  0x35   :  { %686 = vmatmul.mubr.msk.f32.gmra.mrb[12].mxu1 %vm98_vm0, %v38_v31  ;;  %229 = vmatprep.mubr.f32.mxu0 %v803_v0 }
  0x36   :  { %342 = vmatprep.mubr.f32.mxu1 %v803_v0 }
  0x38   :  { %679 = vmatmul.mubr.msk.f32.gmra.mrb[14].mxu0 %vm98_vm0, %v39_v32 }
  0x39   :  { %687 = vmatmul.mubr.msk.f32.gmra.mrb[14].mxu1 %vm98_vm0, %v39_v32  ;;  %413 = vmatprep.mubr.f32.mxu0 %v803_v0 }
  0x3a   :  { %526 = vmatprep.mubr.f32.mxu1 %v803_v0 }
  0x3c   :  { %688 = vmatmul.mubr.msk.f32.vlgmr.msra.gmra.mrb[16].mxu0 %vm98_vm0, %v850_v12 }
  0x3d   :  { %696 = vmatmul.mubr.msk.f32.vlgmr.msra.gmra.mrb[16].mxu1 %vm98_vm0, %v850_v12  ;;  %419 = vmatprep.mubr.f32.mxu0 %v803_v0 }
  0x3e   :  { %532 = vmatprep.mubr.f32.mxu1 %v803_v0 }
  0x40   :  { %689 = vmatmul.mubr.msk.f32.gmra.mrb[18].mxu0 %vm98_vm0, %v33_v26 }
  0x41   :  { %697 = vmatmul.mubr.msk.f32.gmra.mrb[18].mxu1 %vm98_vm0, %v33_v26  ;;  %425 = vmatprep.mubr.f32.mxu0 %v803_v0 }
  0x42   :  { %538 = vmatprep.mubr.f32.mxu1 %v803_v0 }
  0x44   :  { %690 = vmatmul.mubr.msk.f32.gmra.mrb[20].mxu0 %vm98_vm0, %v34_v27 }
  0x45   :  { %698 = vmatmul.mubr.msk.f32.gmra.mrb[20].mxu1 %vm98_vm0, %v34_v27  ;;  %431 = vmatprep.mubr.f32.mxu0 %v803_v0 }
  0x46   :  { %544 = vmatprep.mubr.f32.mxu1 %v803_v0 }
  0x48   :  { %691 = vmatmul.mubr.msk.f32.gmra.mrb[22].mxu0 %vm98_vm0, %v35_v28 }
  0x49   :  { %699 = vmatmul.mubr.msk.f32.gmra.mrb[22].mxu1 %vm98_vm0, %v35_v28  ;;  %437 = vmatprep.mubr.f32.mxu0 %v803_v0 }
  0x4a   :  { %550 = vmatprep.mubr.f32.mxu1 %v803_v0 }
  0x4c   :  { %692 = vmatmul.mubr.msk.f32.gmra.mrb[24].mxu0 %vm98_vm0, %v36_v29 }
  0x4d   :  { %700 = vmatmul.mubr.msk.f32.gmra.mrb[24].mxu1 %vm98_vm0, %v36_v29  ;;  %443 = vmatprep.mubr.f32.mxu0 %v803_v0 }
  0x4e   :  { %556 = vmatprep.mubr.f32.mxu1 %v803_v0 }
  0x50   :  { %693 = vmatmul.mubr.msk.f32.gmra.mrb[26].mxu0 %vm98_vm0, %v37_v30 }
  0x51   :  { %701 = vmatmul.mubr.msk.f32.gmra.mrb[26].mxu1 %vm98_vm0, %v37_v30  ;;  %449 = vmatprep.mubr.f32.mxu0 %v803_v0 }
  0x52   :  { %562 = vmatprep.mubr.f32.mxu1 %v803_v0 }
  0x54   :  { %694 = vmatmul.mubr.msk.f32.gmra.mrb[28].mxu0 %vm98_vm0, %v38_v31 }
  0x55   :  { %702 = vmatmul.mubr.msk.f32.gmra.mrb[28].mxu1 %vm98_vm0, %v38_v31  ;;  %455 = vmatprep.mubr.f32.mxu0 %v803_v0 }
  0x56   :  { %568 = vmatprep.mubr.f32.mxu1 %v803_v0 }
  0x58   :  { %695 = vmatmul.mubr.msk.f32.gmra.mrb[30].mxu0 %vm98_vm0, %v39_v32 }
  0x59   :  { %703 = vmatmul.mubr.msk.f32.gmra.mrb[30].mxu1 %vm98_vm0, %v39_v32  ;;  %v76_v32 = vsub.s32 4, %v939_v34 }
  0xef   :  { %v189_v44 = vpop.f32.mrb[0].mxu0 }
  0xf0   :  { %v190_v45 = vadd.f32 %v189_v44, %v951_v40  ;;  %v302_v46 = vpop.f32.mrb[0].mxu1  ;;  %v191_v47 = vpop.f32.mrb[1].mxu0 }
  0xf1   :  { %v303_v48 = vadd.f32 %v302_v46, %v954_v41  ;;  %v192_v49 = vadd.f32 %v191_v47, %v957_v42  ;;  %v304_v50 = vpop.f32.mrb[1].mxu1 }
  0xf2   :  { %575 = vst [vmem:[#allocation5] sm:$0xff] %v190_v45  ;;  %v305_v51 = vadd.f32 %v304_v50, %v960_v43  ;;  %v88_v45 = vsub.s32 7, %v939_v34  ;;  %v996_v50 = vrot.slane %v945_v36, %v76_v32  ;;  %v1001_v34 = vrot.slane %v945_v36, %v84_v38 }
  0xf3   :  { %577 = vst [vmem:[#allocation5 + $0x10] sm:$0xff] %v303_v48  ;;  %576 = vst [vmem:[#allocation5 + $0x8] sm:$0xff] %v192_v49  ;;  %v195_v52 = vpop.f32.mrb[2].mxu0 }
  0xf4   :  { %578 = vst [vmem:[#allocation5 + $0x18] sm:$0xff] %v305_v51  ;;  %v196_v53 = vadd.f32 %v195_v52, %v951_v40  ;;  %v308_v54 = vpop.f32.mrb[2].mxu1  ;;  %v197_v55 = vpop.f32.mrb[3].mxu0 }
  0xf5   :  { %v309_v56 = vadd.f32 %v308_v54, %v954_v41  ;;  %v198_v57 = vadd.f32 %v197_v55, %v957_v42  ;;  %v310_v58 = vpop.f32.mrb[3].mxu1  ;;  %v1004_v54 = vrot.slane %v945_v36, %v80_v39  ;;  %v1010_v55 = vrot.slane %v945_v36, %v88_v45 }
  0xf6   :  { %579 = vst [vmem:[#allocation5 + $0x20] sm:$0xff] %v196_v53  ;;  %v311_v59 = vadd.f32 %v310_v58, %v960_v43 }
  0xf7   :  { %581 = vst [vmem:[#allocation5 + $0x30] sm:$0xff] %v309_v56  ;;  %580 = vst [vmem:[#allocation5 + $0x28] sm:$0xff] %v198_v57  ;;  %v201_v60 = vpop.f32.mrb[4].mxu0 }
  0xf8   :  { %582 = vst [vmem:[#allocation5 + $0x38] sm:$0xff] %v311_v59  ;;  %v202_v61 = vadd.f32 %v201_v60, %v951_v40  ;;  %v314_v62 = vpop.f32.mrb[4].mxu1  ;;  %v203_v63 = vpop.f32.mrb[5].mxu0 }
  0xf9   :  { %v315_v0 = vadd.f32 %v314_v62, %v954_v41  ;;  %v204_v1 = vadd.f32 %v203_v63, %v957_v42  ;;  %v316_v2 = vpop.f32.mrb[5].mxu1 }
  0xfa   :  { %583 = vst [vmem:[#allocation5 + $0x40] sm:$0xff] %v202_v61  ;;  %v317_v3 = vadd.f32 %v316_v2, %v960_v43 }
  0xfb   :  { %585 = vst [vmem:[#allocation5 + $0x50] sm:$0xff] %v315_v0  ;;  %584 = vst [vmem:[#allocation5 + $0x48] sm:$0xff] %v204_v1  ;;  %v207_v4 = vpop.f32.mrb[6].mxu0 }
  0xfc   :  { %586 = vst [vmem:[#allocation5 + $0x58] sm:$0xff] %v317_v3  ;;  %v208_v5 = vadd.f32 %v207_v4, %v951_v40  ;;  %v320_v6 = vpop.f32.mrb[6].mxu1  ;;  %v209_v7 = vpop.f32.mrb[7].mxu0 }
  0xfd   :  { %v321_v8 = vadd.f32 %v320_v6, %v954_v41  ;;  %v210_v9 = vadd.f32 %v209_v7, %v957_v42  ;;  %v322_v10 = vpop.f32.mrb[7].mxu1 }
  0xfe   :  { %587 = vst [vmem:[#allocation5 + $0x60] sm:$0xff] %v208_v5  ;;  %v323_v11 = vadd.f32 %v322_v10, %v960_v43 }
  0xff   :  { %589 = vst [vmem:[#allocation5 + $0x70] sm:$0xff] %v321_v8  ;;  %588 = vst [vmem:[#allocation5 + $0x68] sm:$0xff] %v210_v9  ;;  %v213_v12 = vpop.f32.mrb[8].mxu0 }
 0x100   :  { %590 = vst [vmem:[#allocation5 + $0x78] sm:$0xff] %v323_v11  ;;  %v214_v13 = vadd.f32 %v213_v12, %v951_v40  ;;  %v326_v14 = vpop.f32.mrb[8].mxu1  ;;  %v215_v15 = vpop.f32.mrb[9].mxu0 }
 0x101   :  { %v327_v16 = vadd.f32 %v326_v14, %v954_v41  ;;  %v216_v17 = vadd.f32 %v215_v15, %v957_v42  ;;  %v328_v18 = vpop.f32.mrb[9].mxu1 }
 0x102   :  { %591 = vst [vmem:[#allocation5 + $0x80] sm:$0xff] %v214_v13  ;;  %v329_v19 = vadd.f32 %v328_v18, %v960_v43 }
 0x103   :  { %593 = vst [vmem:[#allocation5 + $0x90] sm:$0xff] %v327_v16  ;;  %592 = vst [vmem:[#allocation5 + $0x88] sm:$0xff] %v216_v17  ;;  %v219_v20 = vpop.f32.mrb[10].mxu0 }
 0x104   :  { %594 = vst [vmem:[#allocation5 + $0x98] sm:$0xff] %v329_v19  ;;  %v220_v21 = vadd.f32 %v219_v20, %v951_v40  ;;  %v332_v22 = vpop.f32.mrb[10].mxu1  ;;  %v221_v23 = vpop.f32.mrb[11].mxu0 }
 0x105   :  { %v333_v24 = vadd.f32 %v332_v22, %v954_v41  ;;  %v222_v25 = vadd.f32 %v221_v23, %v957_v42  ;;  %v334_v26 = vpop.f32.mrb[11].mxu1 }
 0x106   :  { %595 = vst [vmem:[#allocation5 + $0xa0] sm:$0xff] %v220_v21  ;;  %v335_v27 = vadd.f32 %v334_v26, %v960_v43 }
 0x107   :  { %597 = vst [vmem:[#allocation5 + $0xb0] sm:$0xff] %v333_v24  ;;  %596 = vst [vmem:[#allocation5 + $0xa8] sm:$0xff] %v222_v25  ;;  %v225_v28 = vpop.f32.mrb[12].mxu0 }
 0x108   :  { %598 = vst [vmem:[#allocation5 + $0xb8] sm:$0xff] %v335_v27  ;;  %v226_v29 = vadd.f32 %v225_v28, %v951_v40  ;;  %v338_v30 = vpop.f32.mrb[12].mxu1  ;;  %v227_v31 = vpop.f32.mrb[13].mxu0 }
 0x109   :  { %v339_v33 = vadd.f32 %v338_v30, %v954_v41  ;;  %v228_v35 = vadd.f32 %v227_v31, %v957_v42  ;;  %v340_v37 = vpop.f32.mrb[13].mxu1 }
 0x10a   :  { %599 = vst [vmem:[#allocation5 + $0xc0] sm:$0xff] %v226_v29  ;;  %v341_v44 = vadd.f32 %v340_v37, %v960_v43 }
 0x10b   :  { %601 = vst [vmem:[#allocation5 + $0xd0] sm:$0xff] %v339_v33  ;;  %600 = vst [vmem:[#allocation5 + $0xc8] sm:$0xff] %v228_v35  ;;  %v231_v46 = vpop.f32.mrb[14].mxu0 }
 0x10c   :  { %602 = vst [vmem:[#allocation5 + $0xd8] sm:$0xff] %v341_v44  ;;  %v232_v47 = vadd.f32 %v231_v46, %v951_v40  ;;  %v344_v48 = vpop.f32.mrb[14].mxu1  ;;  %v233_v49 = vpop.f32.mrb[15].mxu0 }
 0x10d   :  { %v345_v51 = vadd.f32 %v344_v48, %v954_v41  ;;  %v234_v52 = vadd.f32 %v233_v49, %v957_v42  ;;  %v346_v53 = vpop.f32.mrb[15].mxu1 }
 0x10e   :  { %603 = vst [vmem:[#allocation5 + $0xe0] sm:$0xff] %v232_v47  ;;  %v347_v40 = vadd.f32 %v346_v53, %v960_v43 }
 0x10f   :  { %605 = vst [vmem:[#allocation5 + $0xf0] sm:$0xff] %v345_v51  ;;  %604 = vst [vmem:[#allocation5 + $0xe8] sm:$0xff] %v234_v52  ;;  %v415_v41 = vpop.f32.mrb[16].mxu0 }
 0x110   :  { %606 = vst [vmem:[#allocation5 + $0xf8] sm:$0xff] %v347_v40  ;;  %v416_v42 = vadd.f32 %v415_v41, %v996_v50  ;;  %v528_v56 = vpop.f32.mrb[16].mxu1  ;;  %v417_v57 = vpop.f32.mrb[17].mxu0 }
 0x111   :  { %v529_v58 = vadd.f32 %v528_v56, %v1001_v34  ;;  %v418_v59 = vadd.f32 %v417_v57, %v1004_v54  ;;  %v530_v60 = vpop.f32.mrb[17].mxu1 }
 0x112   :  { %761 = shalt.err (!%p758_p12)
}
 0x113   :  { %s762_s23 = scalar_lea.hbm %s1082_s3, 4096 }
 0x114   :  { %p763_p13 = scmp.ne.s32.totalorder %s1082_s3, %s762_s23  ;;  %p766_p0 = scmp.lt.u32.totalorder %s762_s23, %s1082_s3 }
 0x116   :  { %p768_p1 = pnand %p766_p0, %p763_p13 }
 0x118   :  { %771 = shalt.err (!%p768_p1)
}
 0x119   :  { %s805_s28 = smov 512   ;;  %s806_s29 = smov 32   ;;  %607 = vst [vmem:[#allocation6] sm:$0xff] %v416_v42  ;;  %v531_v36 = vadd.f32 %v530_v60, %v1010_v55  ;;  %609 = vst [vmem:[#allocation6 + $0x10] sm:$0xff] %v529_v58  ;;  %v421_v43 = vpop.f32.mrb[18].mxu0  ;;  %v534_v62 = vpop.f32.mrb[18].mxu1 }
 0x11a   :  { %650 = dma.vmem_to_hbm [thread:$0]  %s1006_s19, 4096, %s1082_s3, [#allocation4], %s805_s28, %s805_s28, %s806_s29   ;;  %608 = vst [vmem:[#allocation6 + $0x8] sm:$0xff] %v418_v59  ;;  %v422_v61 = vadd.f32 %v421_v43, %v996_v50  ;;  %v423_v63 = vpop.f32.mrb[19].mxu0  ;;  %v535_v0 = vadd.f32 %v534_v62, %v1001_v34  ;;  %v536_v2 = vpop.f32.mrb[19].mxu1 }
 0x11b   :  { %610 = vst [vmem:[#allocation6 + $0x18] sm:$0xff] %v531_v36  ;;  %v424_v1 = vadd.f32 %v423_v63, %v1004_v54  ;;  %v537_v3 = vadd.f32 %v536_v2, %v1010_v55  ;;  %v427_v4 = vpop.f32.mrb[20].mxu0  ;;  %v540_v6 = vpop.f32.mrb[20].mxu1  ;;  %s807_s3 = smov [#allocation6]  }
 0x11c   :  { %611 = vst [vmem:[#allocation6 + $0x20] sm:$0xff] %v422_v61  ;;  %613 = vst [vmem:[#allocation6 + $0x30] sm:$0xff] %v535_v0  ;;  %v428_v5 = vadd.f32 %v427_v4, %v996_v50  ;;  %v429_v7 = vpop.f32.mrb[21].mxu0  ;;  %v541_v8 = vadd.f32 %v540_v6, %v1001_v34  ;;  %v542_v10 = vpop.f32.mrb[21].mxu1  ;;  %s656_s5 = sshll.u32 %s807_s3, 4  ;;  %s657_s5 = int_to_ptr.vmem [resolvable:$true] %s656_s5 }
 0x11d   :  { %612 = vst [vmem:[#allocation6 + $0x28] sm:$0xff] %v424_v1  ;;  %614 = vst [vmem:[#allocation6 + $0x38] sm:$0xff] %v537_v3  ;;  %v430_v9 = vadd.f32 %v429_v7, %v1004_v54  ;;  %v543_v11 = vadd.f32 %v542_v10, %v1010_v55  ;;  %v433_v12 = vpop.f32.mrb[22].mxu0  ;;  %v546_v14 = vpop.f32.mrb[22].mxu1  ;;  %s772_s6 = scalar_lea.vmem %s657_s5, 4096  ;;  %p777_p3 = scmp.lt.s32.totalorder %s657_s5, %s657_s5 }
 0x11e   :  { %615 = vst [vmem:[#allocation6 + $0x40] sm:$0xff] %v428_v5  ;;  %617 = vst [vmem:[#allocation6 + $0x50] sm:$0xff] %v541_v8  ;;  %v434_v13 = vadd.f32 %v433_v12, %v996_v50  ;;  %v435_v15 = vpop.f32.mrb[23].mxu0  ;;  %v547_v16 = vadd.f32 %v546_v14, %v1001_v34  ;;  %v548_v18 = vpop.f32.mrb[23].mxu1  ;;  %p773_p2 = scmp.ne.s32.totalorder %s657_s5, %s772_s6  ;;  %p778_p4 = scmp.lt.s32.totalorder %s772_s6, %s772_s6 }
 0x11f   :  { %616 = vst [vmem:[#allocation6 + $0x48] sm:$0xff] %v430_v9  ;;  %618 = vst [vmem:[#allocation6 + $0x58] sm:$0xff] %v543_v11  ;;  %v436_v17 = vadd.f32 %v435_v15, %v1004_v54  ;;  %v549_v19 = vadd.f32 %v548_v18, %v1010_v55  ;;  %v439_v20 = vpop.f32.mrb[24].mxu0 }
 0x120   :  { %619 = vst [vmem:[#allocation6 + $0x60] sm:$0xff] %v434_v13  ;;  %621 = vst [vmem:[#allocation6 + $0x70] sm:$0xff] %v547_v16  ;;  %v440_v21 = vadd.f32 %v439_v20, %v996_v50  ;;  %v552_v22 = vpop.f32.mrb[24].mxu1  ;;  %v441_v23 = vpop.f32.mrb[25].mxu0  ;;  %p779_p5 = por %p778_p4, %p777_p3 }
 0x121   :  { %620 = vst [vmem:[#allocation6 + $0x68] sm:$0xff] %v436_v17  ;;  %622 = vst [vmem:[#allocation6 + $0x78] sm:$0xff] %v549_v19  ;;  %v553_v24 = vadd.f32 %v552_v22, %v1001_v34  ;;  %v442_v25 = vadd.f32 %v441_v23, %v1004_v54  ;;  %v554_v26 = vpop.f32.mrb[25].mxu1 }
 0x122   :  { %623 = vst [vmem:[#allocation6 + $0x80] sm:$0xff] %v440_v21  ;;  %v555_v27 = vadd.f32 %v554_v26, %v1010_v55  ;;  %p780_p6 = pnand %p779_p5, %p773_p2 }
 0x123   :  { %625 = vst [vmem:[#allocation6 + $0x90] sm:$0xff] %v553_v24  ;;  %624 = vst [vmem:[#allocation6 + $0x88] sm:$0xff] %v442_v25  ;;  %v445_v28 = vpop.f32.mrb[26].mxu0 }
 0x124   :  { %626 = vst [vmem:[#allocation6 + $0x98] sm:$0xff] %v555_v27  ;;  %v446_v29 = vadd.f32 %v445_v28, %v996_v50  ;;  %v558_v30 = vpop.f32.mrb[26].mxu1  ;;  %v447_v31 = vpop.f32.mrb[27].mxu0 }
 0x125   :  { %v559_v32 = vadd.f32 %v558_v30, %v1001_v34  ;;  %v448_v33 = vadd.f32 %v447_v31, %v1004_v54  ;;  %v560_v35 = vpop.f32.mrb[27].mxu1 }
 0x126   :  { %627 = vst [vmem:[#allocation6 + $0xa0] sm:$0xff] %v446_v29  ;;  %v561_v37 = vadd.f32 %v560_v35, %v1010_v55 }
 0x127   :  { %629 = vst [vmem:[#allocation6 + $0xb0] sm:$0xff] %v559_v32  ;;  %628 = vst [vmem:[#allocation6 + $0xa8] sm:$0xff] %v448_v33  ;;  %v451_v38 = vpop.f32.mrb[28].mxu0 }
 0x128   :  { %630 = vst [vmem:[#allocation6 + $0xb8] sm:$0xff] %v561_v37  ;;  %v452_v39 = vadd.f32 %v451_v38, %v996_v50  ;;  %v564_v44 = vpop.f32.mrb[28].mxu1  ;;  %v453_v45 = vpop.f32.mrb[29].mxu0 }
 0x129   :  { %v565_v46 = vadd.f32 %v564_v44, %v1001_v34  ;;  %v454_v47 = vadd.f32 %v453_v45, %v1004_v54  ;;  %v566_v48 = vpop.f32.mrb[29].mxu1 }
 0x12a   :  { %631 = vst [vmem:[#allocation6 + $0xc0] sm:$0xff] %v452_v39  ;;  %v567_v49 = vadd.f32 %v566_v48, %v1010_v55 }
 0x12b   :  { %633 = vst [vmem:[#allocation6 + $0xd0] sm:$0xff] %v565_v46  ;;  %632 = vst [vmem:[#allocation6 + $0xc8] sm:$0xff] %v454_v47  ;;  %v457_v51 = vpop.f32.mrb[30].mxu0 }
 0x12c   :  { %634 = vst [vmem:[#allocation6 + $0xd8] sm:$0xff] %v567_v49  ;;  %v458_v52 = vadd.f32 %v457_v51, %v996_v50  ;;  %v570_v53 = vpop.f32.mrb[30].mxu1  ;;  %v459_v40 = vpop.f32.mrb[31].mxu0 }
 0x12d   :  { %v571_v41 = vadd.f32 %v570_v53, %v1001_v34  ;;  %v460_v42 = vadd.f32 %v459_v40, %v1004_v54  ;;  %v572_v56 = vpop.f32.mrb[31].mxu1 }
 0x12e   :  { %635 = vst [vmem:[#allocation6 + $0xe0] sm:$0xff] %v458_v52  ;;  %v573_v57 = vadd.f32 %v572_v56, %v1010_v55 }
 0x12f   :  { %637 = vst [vmem:[#allocation6 + $0xf0] sm:$0xff] %v571_v41  ;;  %636 = vst [vmem:[#allocation6 + $0xe8] sm:$0xff] %v460_v42 }
 0x130   :  { %638 = vst [vmem:[#allocation6 + $0xf8] sm:$0xff] %v573_v57 }
 0x131   :  { %783 = shalt.err (!%p780_p6)
}
 0x132   :  { %s784_s9 = scalar_lea.hbm %s1083_s4, 4096 }
 0x133   :  { %p785_p7 = scmp.ne.s32.totalorder %s1083_s4, %s784_s9  ;;  %p788_p8 = scmp.lt.u32.totalorder %s784_s9, %s1083_s4 }
 0x135   :  { %p790_p9 = pnand %p788_p8, %p785_p7 }
 0x137   :  { %793 = shalt.err (!%p790_p9)
}
 0x138   :  { %662 = dma.vmem_to_hbm [thread:$0]  %s657_s5, 4096, %s1083_s4, [#allocation7], %s805_s28, %s805_s28, %s806_s29  }
 0x139   :  { %796 = dma.done.wait [#allocation4], 4096  }
 0x13a   :  { %797 = vsyncadd [#allocation4], 4294963200 }
 0x13b   :  { %798 = dma.done.wait [#allocation7], 4096  }
 0x13c   :  { %799 = vsyncadd [#allocation7], 4294963200 }
 0x13d   :  { %669 = vsyncpa [#allocation3], 1 }
 0x13e   :  { %670 = vsyncpa [#allocation4], 1 }
 0x13f   :  { %671 = vsyncpa [#allocation7], 1 }

</bundles_post_ra>
